<compile_context>
chip_gen: v7x
topology: tpu7x:2x2x1
jax: 0.10.0
libtpu: 0.0.40
codegen_flags: <defaults>
</compile_context>

<pallas_src>
import functools

import jax
import jax.numpy as jnp
from jax.experimental import pallas as pl
from jax.experimental.pallas import tpu as pltpu

BN_EPS = 1e-5
LANES = 128

# Row indices into the packed per-feature-vector slab.
_B1, _G1, _BE1, _B2, _G2, _BE2, _B3, _G3, _BE3, _B4 = range(10)


def _mlp_kernel(x_ref, w1_ref, w2_ref, w3_ref, w4_ref, vec_ref, slab_ref,
                *, out_dim):
  """Full forward pass; whole problem resident in VMEM as one block."""
  vecs = vec_ref[...]  # (10, VEC_W) f32: biases / gammas / betas, zero-padded.

  def linear(h, w_ref, b_row, f):
    # bf16 x bf16 on the MXU, f32 accumulation; bias add in f32.
    y = jnp.dot(h.astype(jnp.bfloat16), w_ref[...],
                preferred_element_type=jnp.float32)
    return y + vecs[b_row, :f]

  def bn_train(h, g_row, be_row, f):
    # Training-mode BatchNorm1d (PyTorch default right after __init__):
    # two-pass batch stats (biased variance) + fused affine:
    #   out = (h - mean) * (gamma * rsqrt(var + eps)) + beta
    inv_b = 1.0 / h.shape[0]
    mean = jnp.sum(h, axis=0, keepdims=True) * inv_b
    c = h - mean
    var = jnp.sum(c * c, axis=0, keepdims=True) * inv_b
    scale = vecs[g_row, :f] * jax.lax.rsqrt(var + BN_EPS)
    return c * scale + vecs[be_row, :f]

  x = x_ref[...]

  # Layer 1: Linear(in, 128) -> ReLU -> BN(128)
  h = jnp.maximum(linear(x, w1_ref, _B1, 128), 0.0)
  h = bn_train(h, _G1, _BE1, 128)
  # Layer 2: Linear(128, 256) -> ReLU -> BN(256)
  h = jnp.maximum(linear(h, w2_ref, _B2, 256), 0.0)
  h = bn_train(h, _G2, _BE2, 256)
  # Layer 3: Linear(256, 128) -> ReLU -> BN(128)
  h = jnp.maximum(linear(h, w3_ref, _B3, 128), 0.0)
  h = bn_train(h, _G3, _BE3, 128)
  # Output head: Linear(128, out_dim)
  logits = linear(h, w4_ref, _B4, out_dim)

  # Softmax over the true out_dim lanes (before padding => no masking needed).
  # Exact division: the approx reciprocal's ~1e-3 error is not worth the
  # unmeasurable EUP saving at this size.
  m = jnp.max(logits, axis=-1, keepdims=True)
  e = jnp.exp(logits - m)
  probs = e / jnp.sum(e, axis=-1, keepdims=True)

  # Single lane-dense store: [logits | probs | zero-pad] -> (B, pad_width).
  b_rows = logits.shape[0]
  pad = slab_ref.shape[-1] - 2 * out_dim
  slab_ref[...] = jnp.concatenate(
      [logits, probs, jnp.zeros((b_rows, pad), jnp.float32)], axis=-1)


@jax.jit
def simple_model_forward(x, params):
  """params: flat tuple (w1,b1,g1,be1, w2,b2,g2,be2, w3,b3,g3,be3, w4,b4)."""
  (w1, b1, g1, be1,
   w2, b2, g2, be2,
   w3, b3, g3, be3,
   w4, b4) = params

  B = x.shape[0]
  out_dim = w4.shape[-1]

  # Pack the ten (1,F) vectors into one sublane-dense f32 slab.
  vec_w = -(-max(256, out_dim) // LANES) * LANES
  rows = (b1, g1, be1, b2, g2, be2, b3, g3, be3, b4)
  vec_slab = jnp.zeros((len(rows), vec_w), jnp.float32)
  for i, v in enumerate(rows):
    vec_slab = vec_slab.at[i, :v.shape[-1]].set(v.reshape(-1))

  # bf16 weights/activations for the MXU; f32 accumulation inside the kernel.
  x_bf16 = x.astype(jnp.bfloat16)
  w_bf16 = tuple(w.astype(jnp.bfloat16) for w in (w1, w2, w3, w4))

  # Lane-dense merged output width (multiple of 128, holds logits + probs).
  pad_width = max(LANES, -(-2 * out_dim // LANES) * LANES)

  vmem_spec = pl.BlockSpec(memory_space=pltpu.MemorySpace.VMEM)
  slab = pl.pallas_call(
      functools.partial(_mlp_kernel, out_dim=out_dim),
      out_shape=jax.ShapeDtypeStruct((B, pad_width), jnp.float32),
      in_specs=[vmem_spec] * 6,
      out_specs=vmem_spec,
  )(x_bf16, *w_bf16, vec_slab)

  out = slab[:, :out_dim]
  out_probs = slab[:, out_dim:2 * out_dim]
  return out, out_probs


def init_params(key, input_length, output_length):
  """Deterministic synthetic parameters.  Linear weights stored as (in, out)."""
  dims = [(input_length, 128), (128, 256), (256, 128), (128, output_length)]
  params = []
  for i, (fin, fout) in enumerate(dims):
    kw, kb, key = jax.random.split(key, 3)
    bound = 1.0 / jnp.sqrt(fin)
    w = jax.random.uniform(kw, (fin, fout), jnp.float32, -bound, bound)
    b = jax.random.uniform(kb, (1, fout), jnp.float32, -bound, bound)
    params.extend([w, b])
    if i < 3:  # BatchNorm1d after the first three Linear+ReLU blocks
      kg, kbe, key = jax.random.split(key, 3)
      gamma = 1.0 + 0.1 * jax.random.normal(kg, (1, fout), jnp.float32)
      beta = 0.1 * jax.random.normal(kbe, (1, fout), jnp.float32)
      params.extend([gamma, beta])
  return tuple(params)


if __name__ == "__main__":
  input_length = 32
  output_length = 16
  batch = 8

  key = jax.random.PRNGKey(0)
  kx, kp = jax.random.split(key)
  x = jax.random.normal(kx, (batch, input_length), jnp.float32)
  params = init_params(kp, input_length, output_length)

  out, out_probs = simple_model_forward(x, params)
  jax.block_until_ready((out, out_probs))

  assert out.shape == (batch, output_length)
  assert out_probs.shape == (batch, output_length)
  assert bool(jnp.all(jnp.isfinite(out)))
  assert bool(jnp.all(jnp.isfinite(out_probs)))
  # Exact softmax division -> sums are 1 within f32 rounding.
  assert bool(jnp.allclose(jnp.sum(out_probs, axis=-1), 1.0, atol=1e-5))
  print("KERNEL_OK")
</pallas_src>

<mosaic_0001>
module attributes {stable_mosaic.version = 11 : i64} {
  func.func @_mlp_kernel(%arg0: memref<8x32xbf16, #tpu.memory_space<vmem>>, %arg1: memref<32x128xbf16, #tpu.memory_space<vmem>>, %arg2: memref<128x256xbf16, #tpu.memory_space<vmem>>, %arg3: memref<256x128xbf16, #tpu.memory_space<vmem>>, %arg4: memref<128x16xbf16, #tpu.memory_space<vmem>>, %arg5: memref<10x256xf32, #tpu.memory_space<vmem>>, %arg6: memref<8x128xf32, #tpu.memory_space<vmem>>) attributes {dimension_semantics = [], scalar_prefetch = 0 : i64, scratch_operands = 0 : i64, tpu.core_type = #tpu.core_type<tc>} {
    %c0 = arith.constant 0 : index
    %c0_0 = arith.constant 0 : index
    %0 = vector.load %arg5[%c0, %c0_0] : memref<10x256xf32, #tpu.memory_space<vmem>>, vector<10x256xf32>
    %c0_1 = arith.constant 0 : index
    %c0_2 = arith.constant 0 : index
    %1 = vector.load %arg0[%c0_1, %c0_2] : memref<8x32xbf16, #tpu.memory_space<vmem>>, vector<8x32xbf16>
    %c0_3 = arith.constant 0 : index
    %c0_4 = arith.constant 0 : index
    %2 = vector.load %arg1[%c0_3, %c0_4] : memref<32x128xbf16, #tpu.memory_space<vmem>>, vector<32x128xbf16>
    %cst = arith.constant dense<0.000000e+00> : vector<8x128xf32>
    %3 = tpu.matmul %1, %2, %cst {dimension_numbers = #tpu.dot_dimension_numbers<[1], [0], [0], [1], [0, 0, 1, 1], [], []>} : vector<8x32xbf16>, vector<32x128xbf16>, vector<8x128xf32> -> vector<8x128xf32>
    %4 = vector.extract_strided_slice %0 {offsets = [0, 0], sizes = [1, 128], strides = [1, 1]} : vector<10x256xf32> to vector<1x128xf32>
    %5 = vector.shape_cast %4 : vector<1x128xf32> to vector<128xf32>
    %6 = vector.shape_cast %5 : vector<128xf32> to vector<1x128xf32>
    %7 = vector.broadcast %6 : vector<1x128xf32> to vector<8x128xf32>
    %8 = arith.addf %3, %7 : vector<8x128xf32>
    %cst_5 = arith.constant 0.000000e+00 : f32
    %9 = vector.broadcast %cst_5 : f32 to vector<8x128xf32>
    %10 = arith.maximumf %8, %9 : vector<8x128xf32>
    %cst_6 = arith.constant dense<0.000000e+00> : vector<128xf32>
    %11 = vector.multi_reduction <add>, %10, %cst_6 [0] : vector<8x128xf32> to vector<128xf32>
    %12 = vector.shape_cast %11 : vector<128xf32> to vector<1x128xf32>
    %cst_7 = arith.constant 1.250000e-01 : f32
    %13 = vector.broadcast %cst_7 : f32 to vector<1x128xf32>
    %14 = arith.mulf %12, %13 : vector<1x128xf32>
    %15 = vector.broadcast %14 : vector<1x128xf32> to vector<8x128xf32>
    %16 = arith.subf %10, %15 : vector<8x128xf32>
    %17 = arith.mulf %16, %16 : vector<8x128xf32>
    %cst_8 = arith.constant dense<0.000000e+00> : vector<128xf32>
    %18 = vector.multi_reduction <add>, %17, %cst_8 [0] : vector<8x128xf32> to vector<128xf32>
    %19 = vector.shape_cast %18 : vector<128xf32> to vector<1x128xf32>
    %cst_9 = arith.constant 1.250000e-01 : f32
    %20 = vector.broadcast %cst_9 : f32 to vector<1x128xf32>
    %21 = arith.mulf %19, %20 : vector<1x128xf32>
    %22 = vector.extract_strided_slice %0 {offsets = [1, 0], sizes = [1, 128], strides = [1, 1]} : vector<10x256xf32> to vector<1x128xf32>
    %23 = vector.shape_cast %22 : vector<1x128xf32> to vector<128xf32>
    %cst_10 = arith.constant 9.99999974E-6 : f32
    %24 = vector.broadcast %cst_10 : f32 to vector<1x128xf32>
    %25 = arith.addf %21, %24 : vector<1x128xf32>
    %26 = math.rsqrt %25 : vector<1x128xf32>
    %27 = vector.shape_cast %23 : vector<128xf32> to vector<1x128xf32>
    %28 = arith.mulf %27, %26 : vector<1x128xf32>
    %29 = vector.broadcast %28 : vector<1x128xf32> to vector<8x128xf32>
    %30 = arith.mulf %16, %29 : vector<8x128xf32>
    %31 = vector.extract_strided_slice %0 {offsets = [2, 0], sizes = [1, 128], strides = [1, 1]} : vector<10x256xf32> to vector<1x128xf32>
    %32 = vector.shape_cast %31 : vector<1x128xf32> to vector<128xf32>
    %33 = vector.shape_cast %32 : vector<128xf32> to vector<1x128xf32>
    %34 = vector.broadcast %33 : vector<1x128xf32> to vector<8x128xf32>
    %35 = arith.addf %30, %34 : vector<8x128xf32>
    %36 = arith.truncf %35 : vector<8x128xf32> to vector<8x128xbf16>
    %c0_11 = arith.constant 0 : index
    %c0_12 = arith.constant 0 : index
    %37 = vector.load %arg2[%c0_11, %c0_12] : memref<128x256xbf16, #tpu.memory_space<vmem>>, vector<128x256xbf16>
    %cst_13 = arith.constant dense<0.000000e+00> : vector<8x256xf32>
    %38 = tpu.matmul %36, %37, %cst_13 {dimension_numbers = #tpu.dot_dimension_numbers<[1], [0], [0], [1], [0, 0, 1, 1], [], []>} : vector<8x128xbf16>, vector<128x256xbf16>, vector<8x256xf32> -> vector<8x256xf32>
    %39 = vector.extract_strided_slice %0 {offsets = [3, 0], sizes = [1, 256], strides = [1, 1]} : vector<10x256xf32> to vector<1x256xf32>
    %40 = vector.shape_cast %39 : vector<1x256xf32> to vector<256xf32>
    %41 = vector.shape_cast %40 : vector<256xf32> to vector<1x256xf32>
    %42 = vector.broadcast %41 : vector<1x256xf32> to vector<8x256xf32>
    %43 = arith.addf %38, %42 : vector<8x256xf32>
    %cst_14 = arith.constant 0.000000e+00 : f32
    %44 = vector.broadcast %cst_14 : f32 to vector<8x256xf32>
    %45 = arith.maximumf %43, %44 : vector<8x256xf32>
    %cst_15 = arith.constant dense<0.000000e+00> : vector<256xf32>
    %46 = vector.multi_reduction <add>, %45, %cst_15 [0] : vector<8x256xf32> to vector<256xf32>
    %47 = vector.shape_cast %46 : vector<256xf32> to vector<1x256xf32>
    %cst_16 = arith.constant 1.250000e-01 : f32
    %48 = vector.broadcast %cst_16 : f32 to vector<1x256xf32>
    %49 = arith.mulf %47, %48 : vector<1x256xf32>
    %50 = vector.broadcast %49 : vector<1x256xf32> to vector<8x256xf32>
    %51 = arith.subf %45, %50 : vector<8x256xf32>
    %52 = arith.mulf %51, %51 : vector<8x256xf32>
    %cst_17 = arith.constant dense<0.000000e+00> : vector<256xf32>
    %53 = vector.multi_reduction <add>, %52, %cst_17 [0] : vector<8x256xf32> to vector<256xf32>
    %54 = vector.shape_cast %53 : vector<256xf32> to vector<1x256xf32>
    %cst_18 = arith.constant 1.250000e-01 : f32
    %55 = vector.broadcast %cst_18 : f32 to vector<1x256xf32>
    %56 = arith.mulf %54, %55 : vector<1x256xf32>
    %57 = vector.extract_strided_slice %0 {offsets = [4, 0], sizes = [1, 256], strides = [1, 1]} : vector<10x256xf32> to vector<1x256xf32>
    %58 = vector.shape_cast %57 : vector<1x256xf32> to vector<256xf32>
    %cst_19 = arith.constant 9.99999974E-6 : f32
    %59 = vector.broadcast %cst_19 : f32 to vector<1x256xf32>
    %60 = arith.addf %56, %59 : vector<1x256xf32>
    %61 = math.rsqrt %60 : vector<1x256xf32>
    %62 = vector.shape_cast %58 : vector<256xf32> to vector<1x256xf32>
    %63 = arith.mulf %62, %61 : vector<1x256xf32>
    %64 = vector.broadcast %63 : vector<1x256xf32> to vector<8x256xf32>
    %65 = arith.mulf %51, %64 : vector<8x256xf32>
    %66 = vector.extract_strided_slice %0 {offsets = [5, 0], sizes = [1, 256], strides = [1, 1]} : vector<10x256xf32> to vector<1x256xf32>
    %67 = vector.shape_cast %66 : vector<1x256xf32> to vector<256xf32>
    %68 = vector.shape_cast %67 : vector<256xf32> to vector<1x256xf32>
    %69 = vector.broadcast %68 : vector<1x256xf32> to vector<8x256xf32>
    %70 = arith.addf %65, %69 : vector<8x256xf32>
    %71 = arith.truncf %70 : vector<8x256xf32> to vector<8x256xbf16>
    %c0_20 = arith.constant 0 : index
    %c0_21 = arith.constant 0 : index
    %72 = vector.load %arg3[%c0_20, %c0_21] : memref<256x128xbf16, #tpu.memory_space<vmem>>, vector<256x128xbf16>
    %cst_22 = arith.constant dense<0.000000e+00> : vector<8x128xf32>
    %73 = tpu.matmul %71, %72, %cst_22 {dimension_numbers = #tpu.dot_dimension_numbers<[1], [0], [0], [1], [0, 0, 1, 1], [], []>} : vector<8x256xbf16>, vector<256x128xbf16>, vector<8x128xf32> -> vector<8x128xf32>
    %74 = vector.extract_strided_slice %0 {offsets = [6, 0], sizes = [1, 128], strides = [1, 1]} : vector<10x256xf32> to vector<1x128xf32>
    %75 = vector.shape_cast %74 : vector<1x128xf32> to vector<128xf32>
    %76 = vector.shape_cast %75 : vector<128xf32> to vector<1x128xf32>
    %77 = vector.broadcast %76 : vector<1x128xf32> to vector<8x128xf32>
    %78 = arith.addf %73, %77 : vector<8x128xf32>
    %cst_23 = arith.constant 0.000000e+00 : f32
    %79 = vector.broadcast %cst_23 : f32 to vector<8x128xf32>
    %80 = arith.maximumf %78, %79 : vector<8x128xf32>
    %cst_24 = arith.constant dense<0.000000e+00> : vector<128xf32>
    %81 = vector.multi_reduction <add>, %80, %cst_24 [0] : vector<8x128xf32> to vector<128xf32>
    %82 = vector.shape_cast %81 : vector<128xf32> to vector<1x128xf32>
    %cst_25 = arith.constant 1.250000e-01 : f32
    %83 = vector.broadcast %cst_25 : f32 to vector<1x128xf32>
    %84 = arith.mulf %82, %83 : vector<1x128xf32>
    %85 = vector.broadcast %84 : vector<1x128xf32> to vector<8x128xf32>
    %86 = arith.subf %80, %85 : vector<8x128xf32>
    %87 = arith.mulf %86, %86 : vector<8x128xf32>
    %cst_26 = arith.constant dense<0.000000e+00> : vector<128xf32>
    %88 = vector.multi_reduction <add>, %87, %cst_26 [0] : vector<8x128xf32> to vector<128xf32>
    %89 = vector.shape_cast %88 : vector<128xf32> to vector<1x128xf32>
    %cst_27 = arith.constant 1.250000e-01 : f32
    %90 = vector.broadcast %cst_27 : f32 to vector<1x128xf32>
    %91 = arith.mulf %89, %90 : vector<1x128xf32>
    %92 = vector.extract_strided_slice %0 {offsets = [7, 0], sizes = [1, 128], strides = [1, 1]} : vector<10x256xf32> to vector<1x128xf32>
    %93 = vector.shape_cast %92 : vector<1x128xf32> to vector<128xf32>
    %cst_28 = arith.constant 9.99999974E-6 : f32
    %94 = vector.broadcast %cst_28 : f32 to vector<1x128xf32>
    %95 = arith.addf %91, %94 : vector<1x128xf32>
    %96 = math.rsqrt %95 : vector<1x128xf32>
    %97 = vector.shape_cast %93 : vector<128xf32> to vector<1x128xf32>
    %98 = arith.mulf %97, %96 : vector<1x128xf32>
    %99 = vector.broadcast %98 : vector<1x128xf32> to vector<8x128xf32>
    %100 = arith.mulf %86, %99 : vector<8x128xf32>
    %101 = vector.extract_strided_slice %0 {offsets = [8, 0], sizes = [1, 128], strides = [1, 1]} : vector<10x256xf32> to vector<1x128xf32>
    %102 = vector.shape_cast %101 : vector<1x128xf32> to vector<128xf32>
    %103 = vector.shape_cast %102 : vector<128xf32> to vector<1x128xf32>
    %104 = vector.broadcast %103 : vector<1x128xf32> to vector<8x128xf32>
    %105 = arith.addf %100, %104 : vector<8x128xf32>
    %106 = arith.truncf %105 : vector<8x128xf32> to vector<8x128xbf16>
    %c0_29 = arith.constant 0 : index
    %c0_30 = arith.constant 0 : index
    %107 = vector.load %arg4[%c0_29, %c0_30] : memref<128x16xbf16, #tpu.memory_space<vmem>>, vector<128x16xbf16>
    %cst_31 = arith.constant dense<0.000000e+00> : vector<8x16xf32>
    %108 = tpu.matmul %106, %107, %cst_31 {dimension_numbers = #tpu.dot_dimension_numbers<[1], [0], [0], [1], [0, 0, 1, 1], [], []>} : vector<8x128xbf16>, vector<128x16xbf16>, vector<8x16xf32> -> vector<8x16xf32>
    %109 = vector.extract_strided_slice %0 {offsets = [9, 0], sizes = [1, 16], strides = [1, 1]} : vector<10x256xf32> to vector<1x16xf32>
    %110 = vector.shape_cast %109 : vector<1x16xf32> to vector<16xf32>
    %111 = vector.shape_cast %110 : vector<16xf32> to vector<1x16xf32>
    %112 = vector.broadcast %111 : vector<1x16xf32> to vector<8x16xf32>
    %113 = arith.addf %108, %112 : vector<8x16xf32>
    %cst_32 = arith.constant dense<0xFF800000> : vector<8xf32>
    %114 = vector.multi_reduction <maximumf>, %113, %cst_32 [1] : vector<8x16xf32> to vector<8xf32>
    %115 = vector.shape_cast %114 : vector<8xf32> to vector<8x1xf32>
    %116 = vector.broadcast %115 : vector<8x1xf32> to vector<8x16xf32>
    %117 = arith.subf %113, %116 : vector<8x16xf32>
    %118 = math.exp %117 : vector<8x16xf32>
    %cst_33 = arith.constant dense<0.000000e+00> : vector<8xf32>
    %119 = vector.multi_reduction <add>, %118, %cst_33 [1] : vector<8x16xf32> to vector<8xf32>
    %120 = vector.shape_cast %119 : vector<8xf32> to vector<8x1xf32>
    %121 = vector.broadcast %120 : vector<8x1xf32> to vector<8x16xf32>
    %122 = arith.divf %118, %121 : vector<8x16xf32>
    %cst_34 = arith.constant 0.000000e+00 : f32
    %123 = vector.broadcast %cst_34 : f32 to vector<8x96xf32>
    %124 = tpu.concatenate %113, %122, %123 in 1 : vector<8x16xf32>, vector<8x16xf32>, vector<8x96xf32> -> vector<8x128xf32>
    %c0_35 = arith.constant 0 : index
    %c0_36 = arith.constant 0 : index
    %125 = vector.load %arg6[%c0_35, %c0_36] : memref<8x128xf32, #tpu.memory_space<vmem>>, vector<8x128xf32>
    tpu.vector_store %arg6[%c0_35, %c0_36], %124 {strides = array<i32>} : memref<8x128xf32, #tpu.memory_space<vmem>>, vector<8x128xf32>,
    return
  }
}

</mosaic_0001>

<bundles_post_ra>
// kernel: simple_model_forward.1
= control target key start
LH: loop header
LB: loop body
LE: loop exit
PB: predicated region body
PF: predicated region fallthrough
CT: control target
= control target key end

     0   :  { %v835_v0 = vmov 0.0   ;;  %vm836_vm0 = vmmov 0   ;;  %vm48_vm1 = vcmask 261120   ;;  %v837_v15 = vmov 0   ;;  %s1062_s1 = inlined_call_operand.vmem [shape: bf16[32,128], index: 1, kind: input, shape index: {}]   ;;  %s1063_s0 = inlined_call_operand.vmem [shape: bf16[8,32], index: 0, kind: input, shape index: {}]   ;;  %s1064_s2 = inlined_call_operand.vmem [shape: bf16[128,256], index: 2, kind: input, shape index: {}]   ;;  %s1065_s5 = inlined_call_operand.vmem [shape: f32[10,256], index: 5, kind: input, shape index: {}]   ;;  %s1066_s3 = inlined_call_operand.vmem [shape: bf16[256,128], index: 3, kind: input, shape index: {}]   ;;  %s1067_s4 = inlined_call_operand.vmem [shape: bf16[128,16], index: 4, kind: input, shape index: {}]   ;;  %s1068_s6 = inlined_call_operand.vmem [shape: f32[8,128], index: 6, kind: output, shape index: {}]  }
   0x1   :  { %741 = vmatprep.subr.bf16.mxu0 %v835_v0  ;;  %v773_v1 = vld [vmem:[%s1062_s1] sm:$0xff]   ;;  %745 = vmatprep.mubr.msk.bf16.mxu0 %vm836_vm0, %v835_v0  ;;  %v774_v2 = vld [vmem:[%s1062_s1 + $0x8] sm:$0xff]   ;;  %v778_v6 = vld [vmem:[%s1064_s2 + $0x14] ss:$8 sps:$4 sm:$0xff]   ;;  %v32_v21 = vlaneseq  ;;  %vm641_vm2 = vcmask 130048  }
   0x2   :  { %742 = vmatpush3.bf16.msra.mxu0 %v773_v1  ;;  %v27_v3 = vld [vmem:[%s1063_s0] sm:$0xf]  ;;  %v775_v4 = vld [vmem:[%s1064_s2 + $0x4] ss:$8 sps:$4 sm:$0xff]   ;;  %v780_v7 = vld [vmem:[%s1064_s2 + $0x10] ss:$8 sps:$4 sm:$0xff]   ;;  %259 = vmatprep.mubr.bf16.mxu1 %v837_v15 }
   0x3   :  { %743 = vmatprep.subr.bf16.mxu0 %v835_v0  ;;  %v777_v5 = vld [vmem:[%s1064_s2] ss:$8 sps:$4 sm:$0xff]   ;;  %227 = vmatprep.subr.bf16.mxu1 %v775_v4  ;;  %v781_v8 = vld [vmem:[%s1064_s2 + $0x24] ss:$8 sps:$4 sm:$0xff]   ;;  %v784_v10 = vld [vmem:[%s1064_s2 + $0x34] ss:$8 sps:$4 sm:$0xff]  }
   0x4   :  { %228 = vmatpush1.bf16.msra.mxu1 %v777_v5  ;;  %v783_v9 = vld [vmem:[%s1064_s2 + $0x20] ss:$8 sps:$4 sm:$0xff]   ;;  %v786_v11 = vld [vmem:[%s1064_s2 + $0x30] ss:$8 sps:$4 sm:$0xff]   ;;  %v787_v12 = vld [vmem:[%s1064_s2 + $0x44] ss:$8 sps:$4 sm:$0xff]  }
   0x5   :  { %229 = vmatprep.subr.bf16.mxu1 %v778_v6  ;;  %v789_v13 = vld [vmem:[%s1064_s2 + $0x40] ss:$8 sps:$4 sm:$0xff]   ;;  %v790_v14 = vld [vmem:[%s1064_s2 + $0x54] ss:$8 sps:$4 sm:$0xff]   ;;  %v792_v16 = vld [vmem:[%s1064_s2 + $0x50] ss:$8 sps:$4 sm:$0xff]  }
   0x6   :  { %744 = vmatpush3.bf16.msra.mxu0 %v774_v2  ;;  %v793_v17 = vld [vmem:[%s1064_s2 + $0x64] ss:$8 sps:$4 sm:$0xff]   ;;  %v795_v18 = vld [vmem:[%s1064_s2 + $0x60] ss:$8 sps:$4 sm:$0xff]   ;;  %v796_v19 = vld [vmem:[%s1064_s2 + $0x74] ss:$8 sps:$4 sm:$0xff]  }
   0x7   :  { %v798_v20 = vld [vmem:[%s1064_s2 + $0x70] ss:$8 sps:$4 sm:$0xff]   ;;  %v937_v22 = vshrl.u32 %v32_v21, 7  ;;  %v943_v24 = vld [vmem:[%s1065_s5] sm:$0xff]  ;;  %v801_v60 = vld [vmem:[%s1066_s3 + $0x48] sm:$0xff]  }
   0x8   :  { %230 = vmatpush1.bf16.msra.mxu1 %v780_v7  ;;  %v799_v58 = vld [vmem:[%s1066_s3 + $0x40] sm:$0xff]   ;;  %v802_v61 = vld [vmem:[%s1066_s3 + $0x8] sm:$0xff]   ;;  %v803_v62 = vld [vmem:[%s1066_s3 + $0x50] sm:$0xff]  }
   0x9   :  { %746 = vmatmul.mubr.msk.bf16.vlgmr.msra.gmra.mrb[0].mxu0 %vm48_vm1, %v27_v3  ;;  %231 = vmatprep.subr.bf16.mxu1 %v781_v8  ;;  %v34_v23 = vsub.s32 0, %v937_v22  ;;  %v114_v49 = vsub.s32 1, %v937_v22  ;;  %v119_v50 = vsub.s32 2, %v937_v22  ;;  %v800_v59 = vld [vmem:[%s1066_s3] sm:$0xff]   ;;  %v804_v63 = vld [vmem:[%s1066_s3 + $0x10] sm:$0xff]   ;;  %v805_v1 = vld [vmem:[%s1066_s3 + $0x58] sm:$0xff]  }
   0xa   :  { %710 = vmatprep.subr.bf16.mxu0 %v799_v58  ;;  %v806_v2 = vld [vmem:[%s1066_s3 + $0x18] sm:$0xff]   ;;  %v807_v3 = vld [vmem:[%s1066_s3 + $0x60] sm:$0xff]   ;;  %v809_v5 = vld [vmem:[%s1066_s3 + $0x68] sm:$0xff]  }
   0xb   :  { %v35_v25 = vrot.slane %v943_v24, %v34_v23  ;;  %v120_v54 = vrot.slane %v943_v24, %v119_v50  ;;  %711 = vmatpush3.bf16.msra.mxu0 %v800_v59  ;;  %v808_v4 = vld [vmem:[%s1066_s3 + $0x20] sm:$0xff]   ;;  %v810_v6 = vld [vmem:[%s1066_s3 + $0x28] sm:$0xff]   ;;  %v811_v7 = vld [vmem:[%s1066_s3 + $0x70] sm:$0xff]  }
   0xc   :  { %232 = vmatpush1.bf16.msra.mxu1 %v783_v9  ;;  %712 = vmatprep.subr.bf16.mxu0 %v801_v60  ;;  %v812_v8 = vld [vmem:[%s1066_s3 + $0x30] sm:$0xff]   ;;  %v813_v9 = vld [vmem:[%s1066_s3 + $0x78] sm:$0xff]  }
   0xd   :  { %233 = vmatprep.subr.bf16.mxu1 %v784_v10  ;;  %v814_v10 = vld [vmem:[%s1066_s3 + $0x38] sm:$0xff]  }
   0xf   :  { %713 = vmatpush3.bf16.msra.mxu0 %v802_v61  ;;  %v310_v61 = vsub.s32 4, %v937_v22 }
  0x10   :  { %234 = vmatpush1.bf16.msra.mxu1 %v786_v11  ;;  %714 = vmatprep.subr.bf16.mxu0 %v803_v62  ;;  %v141_v11 = vsub.s32 3, %v937_v22  ;;  %v320_v62 = vsub.s32 5, %v937_v22 }
  0x11   :  { %235 = vmatprep.subr.bf16.mxu1 %v787_v12  ;;  %v25_v12 = vld [vmem:[%s1065_s5 + $0x8] sm:$0xff] }
  0x13   :  { %715 = vmatpush3.bf16.msra.mxu0 %v804_v63 }
  0x14   :  { %236 = vmatpush1.bf16.msra.mxu1 %v789_v13  ;;  %716 = vmatprep.subr.bf16.mxu0 %v805_v1  ;;  %v142_v13 = vrot.slane %v943_v24, %v141_v11 }
  0x15   :  { %237 = vmatprep.subr.bf16.mxu1 %v790_v14  ;;  %v146_v14 = vrot.slane %v25_v12, %v141_v11 }
  0x17   :  { %717 = vmatpush3.bf16.msra.mxu0 %v806_v2 }
  0x18   :  { %238 = vmatpush1.bf16.msra.mxu1 %v792_v16  ;;  %718 = vmatprep.subr.bf16.mxu0 %v807_v3 }
  0x19   :  { %239 = vmatprep.subr.bf16.mxu1 %v793_v17 }
  0x1b   :  { %719 = vmatpush3.bf16.msra.mxu0 %v808_v4 }
  0x1c   :  { %240 = vmatpush1.bf16.msra.mxu1 %v795_v18  ;;  %720 = vmatprep.subr.bf16.mxu0 %v809_v5  ;;  %v321_v5 = vrot.slane %v943_v24, %v320_v62 }
  0x1d   :  { %241 = vmatprep.subr.bf16.mxu1 %v796_v19 }
  0x1f   :  { %721 = vmatpush3.bf16.msra.mxu0 %v810_v6 }
  0x20   :  { %242 = vmatpush1.bf16.msra.mxu1 %v798_v20  ;;  %722 = vmatprep.subr.bf16.mxu0 %v811_v7  ;;  %v325_v7 = vrot.slane %v25_v12, %v320_v62 }
  0x21   :  { %749 = vmatprep.subr.bf16.mxu1 %v835_v0 }
  0x23   :  { %723 = vmatpush3.bf16.msra.mxu0 %v812_v8 }
  0x24   :  { %724 = vmatprep.subr.bf16.mxu0 %v813_v9 }
  0x27   :  { %725 = vmatpush3.bf16.msra.mxu0 %v814_v10 }
  0xdc   :  { %v86_v26 = vpop.f32.mrb[0].mxu0 }
  0xdd   :  { %v87_v27 = vadd.f32 %v86_v26, %v35_v25  ;;  %v747_v28 = vpop.f32.mrb[1].mxu0 }
  0xde   :  { %v89_v29 = vpop.f32.mrb[2].mxu0 }
  0xdf   :  { %v92_v30 = vmax.f32 %v87_v27, 0.0  ;;  %v748_v31 = vpop.f32.mrb[3].mxu0 }
  0xe1   :  { %v93_v32 = vrot.slane %v92_v30, 4 }
  0xe3   :  { %v94_v33 = vadd.f32 %v93_v32, %v92_v30 }
  0xe5   :  { %v95_v34 = vrot.slane %v94_v33, 2 }
  0xe7   :  { %v96_v35 = vadd.f32 %v95_v34, %v94_v33 }
  0xe9   :  { %v97_v36 = vrot.slane %v96_v35, 1 }
  0xeb   :  { %v98_v37 = vadd.f32 %v97_v36, %v96_v35 }
  0xed   :  { %v99_v38 = vmul.f32 0.125, %v98_v37 }
  0xef   :  { %v100_v39 = vsub.f32 %v92_v30, %v99_v38 }
  0xf1   :  { %v101_v40 = vmul.f32 %v100_v39, %v100_v39 }
  0xf3   :  { %v102_v41 = vrot.slane %v101_v40, 4 }
  0xf5   :  { %v103_v42 = vadd.f32 %v102_v41, %v101_v40 }
  0xf7   :  { %v104_v43 = vrot.slane %v103_v42, 2 }
  0xf9   :  { %v105_v44 = vadd.f32 %v104_v43, %v103_v42 }
  0xfb   :  { %v106_v45 = vrot.slane %v105_v44, 1 }
  0xfd   :  { %v107_v46 = vadd.f32 %v106_v45, %v105_v44 }
  0xff   :  { %v108_v47 = vmul.f32 0.125, %v107_v46 }
 0x101   :  { %v109_v48 = vadd.f32 1e-05, %v108_v47 }
 0x103   :  { %823 = vrsqrt.f32 %v109_v48 }
 0x10d   :  { %v824_v51 = vpop.eup %823 }
 0x10e   :  { %v111_v52 = vmul.f32 %v824_v51, %v943_v24 }
 0x110   :  { %v115_v53 = vrot.slane %v111_v52, %v114_v49 }
 0x112   :  { %v116_v55 = vmul.f32 %v115_v53, %v100_v39 }
 0x114   :  { %v121_v56 = vadd.f32 %v120_v54, %v116_v55 }
 0x116   :  { %v122_v57 = vpack.c.bf16 %v121_v56, %v121_v56 }
 0x118   :  { %260 = vmatmul.mubr.bf16.vlgmr.msra.gmra.mrb[0].mxu1 %v122_v57 }
 0x119   :  { %765 = vmatprep.mubr.msk.bf16.mxu1 %vm836_vm0, %v835_v0 }
 0x1eb   :  { %v261_v15 = vpop.f32.mrb[0].mxu1 }
 0x1ec   :  { %v262_v16 = vadd.f32 %v261_v15, %v142_v13  ;;  %v263_v17 = vpop.f32.mrb[1].mxu1  ;;  %v815_v15 = vld [vmem:[%s1067_s4] sm:$0xff]  }
 0x1ed   :  { %v264_v18 = vadd.f32 %v263_v17, %v146_v14  ;;  %v265_v19 = vpop.f32.mrb[2].mxu1  ;;  %750 = vmatpush3.bf16.msra.mxu1 %v815_v15  ;;  %v818_v17 = vld [vmem:[%s1067_s4 + $0x18] sm:$0xff]  }
 0x1ee   :  { %v268_v20 = vmax.f32 %v262_v16, 0.0  ;;  %v266_v21 = vpop.f32.mrb[3].mxu1  ;;  %751 = vmatprep.subr.bf16.mxu1 %v835_v0  ;;  %v816_v16 = vld [vmem:[%s1067_s4 + $0x8] sm:$0xff]  }
 0x1ef   :  { %v269_v25 = vmax.f32 %v264_v18, 0.0  ;;  %v819_v18 = vld [vmem:[%s1067_s4 + $0x20] sm:$0xff]   ;;  %v820_v19 = vld [vmem:[%s1067_s4 + $0x28] sm:$0xff]   ;;  %v822_v21 = vld [vmem:[%s1067_s4 + $0x38] sm:$0xff]  }
 0x1f0   :  { %v270_v26 = vrot.slane %v268_v20, 4 }
 0x1f1   :  { %v276_v27 = vrot.slane %v269_v25, 4  ;;  %752 = vmatpush3.bf16.msra.mxu1 %v816_v16 }
 0x1f2   :  { %v271_v28 = vadd.f32 %v270_v26, %v268_v20  ;;  %753 = vmatprep.subr.bf16.mxu1 %v835_v0 }
 0x1f3   :  { %v277_v29 = vadd.f32 %v276_v27, %v269_v25 }
 0x1f4   :  { %v272_v30 = vrot.slane %v271_v28, 2 }
 0x1f5   :  { %v278_v31 = vrot.slane %v277_v29, 2 }
 0x1f6   :  { %v273_v32 = vadd.f32 %v272_v30, %v271_v28 }
 0x1f7   :  { %v279_v33 = vadd.f32 %v278_v31, %v277_v29 }
 0x1f8   :  { %v274_v34 = vrot.slane %v273_v32, 1 }
 0x1f9   :  { %v280_v35 = vrot.slane %v279_v33, 1 }
 0x1fa   :  { %v275_v36 = vadd.f32 %v274_v34, %v273_v32 }
 0x1fb   :  { %v281_v37 = vadd.f32 %v280_v35, %v279_v33 }
 0x1fc   :  { %v282_v38 = vmul.f32 0.125, %v275_v36 }
 0x1fd   :  { %v283_v39 = vmul.f32 0.125, %v281_v37 }
 0x1fe   :  { %v284_v40 = vsub.f32 %v268_v20, %v282_v38  ;;  %v821_v20 = vld [vmem:[%s1067_s4 + $0x30] sm:$0xff]  }
 0x1ff   :  { %v285_v41 = vsub.f32 %v269_v25, %v283_v39  ;;  %v364_v25 = vsub.s32 6, %v937_v22 }
 0x200   :  { %v286_v42 = vmul.f32 %v284_v40, %v284_v40 }
 0x201   :  { %v287_v43 = vmul.f32 %v285_v41, %v285_v41  ;;  %v365_v27 = vrot.slane %v943_v24, %v364_v25 }
 0x202   :  { %v288_v44 = vrot.slane %v286_v42, 4 }
 0x203   :  { %v294_v45 = vrot.slane %v287_v43, 4 }
 0x204   :  { %v289_v46 = vadd.f32 %v288_v44, %v286_v42 }
 0x205   :  { %v295_v47 = vadd.f32 %v294_v45, %v287_v43 }
 0x206   :  { %v290_v48 = vrot.slane %v289_v46, 2 }
 0x207   :  { %v296_v50 = vrot.slane %v295_v47, 2 }
 0x208   :  { %v291_v51 = vadd.f32 %v290_v48, %v289_v46 }
 0x209   :  { %v297_v52 = vadd.f32 %v296_v50, %v295_v47 }
 0x20a   :  { %v292_v53 = vrot.slane %v291_v51, 1 }
 0x20b   :  { %v298_v54 = vrot.slane %v297_v52, 1 }
 0x20c   :  { %v293_v55 = vadd.f32 %v292_v53, %v291_v51  ;;  %v524_v51 = vsub.s32 7, %v937_v22  ;;  %v26_v53 = vld [vmem:[%s1065_s5 + $0x10] sm:$0x3]  ;;  %s838_s5 = smov 16  }
 0x20d   :  { %v299_v56 = vadd.f32 %v298_v54, %v297_v52 }
 0x20e   :  { %v300_v57 = vmul.f32 0.125, %v293_v55  ;;  %v530_v55 = vrot.slane %v26_v53, %v34_v23 }
 0x20f   :  { %v301_v58 = vmul.f32 0.125, %v299_v56 }
 0x210   :  { %v302_v59 = vadd.f32 1e-05, %v300_v57 }
 0x211   :  { %v303_v60 = vadd.f32 1e-05, %v301_v58 }
 0x212   :  { %825 = vrsqrt.f32 %v302_v59 }
 0x213   :  { %827 = vrsqrt.f32 %v303_v60  ;;  %v552_v60 = vrot.slane %v26_v53, %v114_v49 }
 0x21c   :  { %v826_v63 = vpop.eup %825 }
 0x21d   :  { %v828_v1 = vpop.eup %827  ;;  %v306_v2 = vmul.f32 %v826_v63, %v943_v24 }
 0x21e   :  { %v307_v3 = vmul.f32 %v828_v1, %v25_v12  ;;  %v817_v12 = vld [vmem:[%s1067_s4 + $0x10] sm:$0xff]  }
 0x21f   :  { %v311_v4 = vrot.slane %v306_v2, %v310_v61  ;;  %754 = vmatpush3.bf16.msra.mxu1 %v817_v12 }
 0x220   :  { %v315_v6 = vrot.slane %v307_v3, %v310_v61  ;;  %755 = vmatprep.subr.bf16.mxu1 %v835_v0 }
 0x221   :  { %v316_v8 = vmul.f32 %v311_v4, %v284_v40 }
 0x222   :  { %v317_v9 = vmul.f32 %v315_v6, %v285_v41 }
 0x223   :  { %v326_v10 = vadd.f32 %v321_v5, %v316_v8  ;;  %756 = vmatpush3.bf16.msra.mxu1 %v818_v17 }
 0x224   :  { %v327_v11 = vadd.f32 %v325_v7, %v317_v9  ;;  %757 = vmatprep.subr.bf16.mxu1 %v835_v0 }
 0x225   :  { %v328_v14 = vpack.c.bf16 %v326_v10, %v326_v10 }
 0x226   :  { %v329_v13 = vpack.c.bf16 %v327_v11, %v327_v11 }
 0x227   :  { %758 = vmatpush3.bf16.msra.mxu1 %v819_v18 }
 0x228   :  { %494 = vmatprep.mubr.bf16.mxu0 %v329_v13  ;;  %759 = vmatprep.subr.bf16.mxu1 %v835_v0 }
 0x229   :  { %495 = vmatmul.mubr.bf16.vlgmr.msra.gmra.mrb[4].mxu0 %v328_v14 }
 0x22b   :  { %760 = vmatpush3.bf16.msra.mxu1 %v820_v19 }
 0x22c   :  { %761 = vmatprep.subr.bf16.mxu1 %v835_v0 }
 0x22f   :  { %762 = vmatpush3.bf16.msra.mxu1 %v821_v20 }
 0x230   :  { %763 = vmatprep.subr.bf16.mxu1 %v835_v0 }
 0x233   :  { %764 = vmatpush3.bf16.msra.mxu1 %v822_v21 }
 0x2fc   :  { %v726_v26 = vpop.f32.mrb[4].mxu0 }
 0x2fd   :  { %v727_v28 = vpop.f32.mrb[5].mxu0 }
 0x2fe   :  { %v728_v29 = vadd.f32 %v727_v28, %v726_v26  ;;  %v729_v30 = vpop.f32.mrb[6].mxu0 }
 0x2ff   :  { %v730_v31 = vpop.f32.mrb[7].mxu0 }
 0x300   :  { %v497_v32 = vadd.f32 %v728_v29, %v365_v27 }
 0x302   :  { %v502_v33 = vmax.f32 %v497_v32, 0.0 }
 0x304   :  { %v503_v34 = vrot.slane %v502_v33, 4 }
 0x306   :  { %v504_v35 = vadd.f32 %v503_v34, %v502_v33 }
 0x308   :  { %v505_v36 = vrot.slane %v504_v35, 2 }
 0x30a   :  { %v506_v0 = vadd.f32 %v505_v36, %v504_v35 }
 0x30c   :  { %v507_v37 = vrot.slane %v506_v0, 1 }
 0x30e   :  { %v508_v38 = vadd.f32 %v507_v37, %v506_v0 }
 0x310   :  { %v509_v39 = vmul.f32 0.125, %v508_v38 }
 0x312   :  { %v510_v40 = vsub.f32 %v502_v33, %v509_v39 }
 0x314   :  { %v511_v41 = vmul.f32 %v510_v40, %v510_v40 }
 0x316   :  { %v512_v42 = vrot.slane %v511_v41, 4 }
 0x318   :  { %v513_v43 = vadd.f32 %v512_v42, %v511_v41 }
 0x31a   :  { %v514_v44 = vrot.slane %v513_v43, 2 }
 0x31c   :  { %v515_v45 = vadd.f32 %v514_v44, %v513_v43 }
 0x31e   :  { %v516_v46 = vrot.slane %v515_v45, 1 }
 0x320   :  { %v517_v47 = vadd.f32 %v516_v46, %v515_v45 }
 0x322   :  { %v518_v48 = vmul.f32 0.125, %v517_v47 }
 0x324   :  { %v519_v50 = vadd.f32 1e-05, %v518_v48 }
 0x326   :  { %829 = vrsqrt.f32 %v519_v50 }
 0x330   :  { %v830_v52 = vpop.eup %829 }
 0x331   :  { %v521_v54 = vmul.f32 %v830_v52, %v943_v24 }
 0x333   :  { %v525_v56 = vrot.slane %v521_v54, %v524_v51 }
 0x335   :  { %v526_v57 = vmul.f32 %v525_v56, %v510_v40 }
 0x337   :  { %v531_v58 = vadd.f32 %v530_v55, %v526_v57 }
 0x339   :  { %v532_v59 = vpack.c.bf16 %v531_v58, %v531_v58 }
 0x33b   :  { %766 = vmatmul.mubr.bf16.vlgmr.msra.gmra.mrb[4].mxu1 %v532_v59 }
 0x40e   :  { %v635_v61 = vpop.f32.mrb[4].mxu1 }
 0x40f   :  { %v636_v62 = vadd.f32 %v635_v61, %v552_v60  ;;  %v767_v63 = vpop.f32.mrb[5].mxu1 }
 0x410   :  { %v638_v1 = vpop.f32.mrb[6].mxu1 }
 0x411   :  { %v768_v2 = vpop.f32.mrb[7].mxu1  ;;  %v642_v3 = vsel %vm641_vm2, %v636_v62, -inf }
 0x412   :  { %643 = vmax.xlane.f32.xlu0 %v642_v3 }
 0x49f   :  { %v644_v24 = vpop.xlane.xlu0 %643 }
 0x4a0   :  { %v645_v4 = vsub.f32 %v636_v62, %v644_v24 }
 0x4a2   :  { %v646_v23 = vmul.f32 1.442695, %v645_v4 }
 0x4a4   :  { %831 = vpow2.f32 %v646_v23 }
 0x4ae   :  { %v832_v5 = vpop.eup %831 }
 0x4af   :  { %v648_v6 = vsel %vm641_vm2, %v832_v5, 0.0 }
 0x4b0   :  { %649 = vadd.xlane.f32.xlu0 %v648_v6 }
 0x53d   :  { %v650_v7 = vpop.xlane.xlu0 %649 }
 0x53e   :  { %833 = vrcp.f32 %v650_v7 }
 0x548   :  { %v834_v22 = vpop.eup %833 }
 0x549   :  { %v652_v49 = vmul.f32 %v834_v22, %v832_v5 }
 0x54b   :  { %654 = vrot.lane.b32.xlu1 %v652_v49, %s838_s5 }
 0x5bd   :  { %v655_v8 = vpop.permute.xlu1 %654 }
 0x5be   :  { %v657_v9 = vsel %vm641_vm2, %v636_v62, %v655_v8 }
 0x5bf   :  { %v658_v10 = vsel %vm48_vm1, %v657_v9, 0.0 }
 0x5c0   :  { %659 = vst [vmem:[%s1068_s6] sm:$0xff] %v658_v10 }

</bundles_post_ra>
